<compile_context>
chip_gen: v5e
topology: v5e:2x2
jax: 0.10.0
libtpu: 0.0.40
codegen_flags: <defaults>
</compile_context>

<pallas_src>
import math
from typing import NamedTuple

import jax
import jax.numpy as jnp
from jax.experimental import pallas as pl
from jax.experimental.pallas import tpu as pltpu


def _round_up(n, m):
    return ((n + m - 1) // m) * m


def _pad2(a, rows, cols):
    r, c = a.shape
    if r == rows and c == cols:
        return a
    return jnp.pad(a, ((0, rows - r), (0, cols - c)))


class MLPParams(NamedTuple):
    w1: jax.Array   # (I, Hp)  bf16, zero-padded to Hp = round_up(H, 128)
    b1: jax.Array   # (1, Hp)  f32, zero-padded
    w2: jax.Array   # (Hp, Op) bf16, zero-padded (padded ROWS must stay zero)
    b2: jax.Array   # (1, Op)  f32, zero-padded
    hidden: int     # true H
    out: int        # true O


def prepare_params(w1, b1, w2, b2, *, param_dtype=jnp.bfloat16):
    """One-time parameter prep: pad to lane-dense shapes and cast weights.

    w1: (input, hidden), w2: (hidden, output)  (i.e. nn.Linear.weight.T)
    b1: (hidden,) or (1, hidden), b2: (output,) or (1, output)
    """
    I, H = w1.shape
    H2, O = w2.shape
    assert H == H2
    Hp = _round_up(H, 128)
    Op = _round_up(O, 128)
    # TODO(synk): for large, non-128-aligned input sizes also pad I (and the
    # caller's x layout) so the fc1 contraction is lane-dense on the MXU.
    w1p = _pad2(w1.astype(jnp.float32), I, Hp).astype(param_dtype)
    w2p = _pad2(w2.astype(jnp.float32), Hp, Op).astype(param_dtype)
    b1p = _pad2(jnp.asarray(b1, jnp.float32).reshape(1, -1), 1, Hp)
    b2p = _pad2(jnp.asarray(b2, jnp.float32).reshape(1, -1), 1, Op)
    return MLPParams(w1p, b1p, w2p, b2p, H, O)


def mlp_kernel(x_ref, w1_ref, b1_ref, w2_ref, b2_ref, o_ref):
    # fc1: (TB, I) @ (I, Hp) -> f32 accumulation on the MXU (bf16 operands).
    x = x_ref[...].astype(jnp.bfloat16)
    h = jnp.dot(x, w1_ref[...], preferred_element_type=jnp.float32)
    h = h + b1_ref[...]
    # sigmoid in f32 on the EUP, then back to bf16 for the second MXU pass.
    s = jax.nn.sigmoid(h).astype(jnp.bfloat16)
    # fc2: (TB, Hp) @ (Hp, TO) -> f32 accumulation.
    y = jnp.dot(s, w2_ref[...], preferred_element_type=jnp.float32)
    y = y + b2_ref[...]
    # Store only the valid output columns of this block (static slice).
    o_ref[...] = y[:, : o_ref.shape[-1]].astype(o_ref.dtype)


def _vmem_budget_bytes():
    try:
        cap = int(pltpu.get_tpu_info().vmem_capacity_bytes)
    except Exception:
        cap = 64 * 1024 * 1024          # v7x-safe fallback
    return (3 * cap) // 4               # leave headroom for compiler scratch


def _choose_tiles(B, I, Hp, Op, O, budget, max_batch_tile):
    """Pick (TB, TO, out_total) against an explicit VMEM budget.

    Weight operands are double-buffered by the pipeline (constant index_map
    means they are DMA'd only once, but 2 buffers are still allocated), hence
    the factor of 2 below.
    """
    def resident_bytes(to):
        return 2 * (I * Hp * 2 + Hp * 4 + Hp * to * 2 + to * 4)

    def per_row_bytes(to, o_cols):
        # double-buffered x tile + out tile, plus f32/bf16 intermediates.
        return 2 * I * 4 + 2 * o_cols * 4 + Hp * 4 + to * 4 + Hp * 2

    def max_tb(to, o_cols):
        avail = budget - resident_bytes(to)
        if avail <= 0:
            return 0
        tb = min(int(avail // per_row_bytes(to, o_cols)),
                 max_batch_tile, _round_up(B, 8))
        return (tb // 8) * 8

    # Preferred: both weight matrices fully VMEM-resident, unpadded output.
    tb = max_tb(Op, O)
    if tb >= 8:
        return tb, Op, O
    # Fallback (large models / v7x 64 MiB VMEM): tile the fc2 output columns so
    # only an (Hp, 128) slice of W2 is resident per grid step.
    # TODO(synk): if W1 alone exceeds the budget, additionally tile the Hp
    # reduction axis ("arbitrary" axis + VMEM accumulator + pl.when init/final).
    tb = max_tb(128, 128)
    if tb < 8:
        raise ValueError("fc1 weights alone exceed the VMEM budget; "
                         "Hp reduction tiling is not implemented")
    return tb, 128, Op


def nn_classifier_forward(x, params: MLPParams, *, max_batch_tile=1024):
    """Forward pass: sigmoid(x @ W1 + b1) @ W2 + b2.

    Note: at demo-scale shapes the kernel is overhead-dominated and plain XLA
    would be faster; this path is intended for batch/hidden/output in the
    hundreds+ (kept on Pallas here since exercising the kernel is the point).
    """
    B, I = x.shape
    I2, Hp = params.w1.shape
    Hp2, Op = params.w2.shape
    assert I == I2 and Hp == Hp2
    H, O = params.hidden, params.out

    budget = _vmem_budget_bytes()
    TB, TO, out_total = _choose_tiles(B, I, Hp, Op, O, budget, max_batch_tile)

    # v7x megacore: make sure the "parallel" batch axis has >= 2 steps whenever
    # the batch is big enough to split; otherwise one TensorCore idles.
    if pl.cdiv(B, TB) == 1 and B > 8:
        TB = max(8, ((_round_up(B, 16) // 2) // 8) * 8)

    nb = pl.cdiv(B, TB)
    no = Op // TO
    out_block_cols = out_total // no

    cost = pl.CostEstimate(                       # true (unpadded) work
        flops=2 * B * (I * H + H * O),
        transcendentals=B * H,
        bytes_accessed=int(x.nbytes + params.w1.nbytes + params.b1.nbytes
                           + params.w2.nbytes + params.b2.nbytes
                           + 4 * B * out_total),
    )

    out = pl.pallas_call(
        mlp_kernel,
        out_shape=jax.ShapeDtypeStruct((B, out_total), jnp.float32),
        grid_spec=pl.GridSpec(
            grid=(nb, no),
            in_specs=[
                # activations: streamed per batch tile (no HBM-side padding)
                pl.BlockSpec((TB, I), lambda i, j: (i, 0)),
                # fc1 weights / bias: VMEM-resident across all grid steps
                pl.BlockSpec((I, Hp), lambda i, j: (0, 0)),
                pl.BlockSpec((1, Hp), lambda i, j: (0, 0)),
                # fc2 weights / bias: fully resident (no == 1) or column-tiled
                pl.BlockSpec((Hp, TO), lambda i, j: (0, j)),
                pl.BlockSpec((1, TO), lambda i, j: (0, j)),
            ],
            out_specs=pl.BlockSpec((TB, out_block_cols), lambda i, j: (i, j)),
        ),
        compiler_params=pltpu.CompilerParams(
            dimension_semantics=("parallel", "parallel"),
            vmem_limit_bytes=budget,
        ),
        cost_estimate=cost,
    )(x, params.w1, params.b1, params.w2, params.b2)

    if out_total != O:       # only the column-tiled fallback needs a slice
        out = out[:, :O]
    return out


def xavier_uniform(key, fan_in, fan_out):
    # matches torch.nn.init.xavier_uniform_ (gain=1); stored (fan_in, fan_out)
    limit = math.sqrt(6.0 / (fan_in + fan_out))
    return jax.random.uniform(key, (fan_in, fan_out), jnp.float32, -limit, limit)


if __name__ == "__main__":
    input_size, hidden_size, output_size = 16, 32, 8
    batch = 32

    key = jax.random.PRNGKey(0)
    kx, kw1, kw2, kb1, kb2 = jax.random.split(key, 5)

    x = jax.random.normal(kx, (batch, input_size), jnp.float32)

    # Synthetic parameters; biases use the nn.Linear default init range.
    w1 = xavier_uniform(kw1, input_size, hidden_size)
    w2 = xavier_uniform(kw2, hidden_size, output_size)
    b1 = jax.random.uniform(kb1, (1, hidden_size), jnp.float32,
                            -1.0 / math.sqrt(input_size), 1.0 / math.sqrt(input_size))
    b2 = jax.random.uniform(kb2, (1, output_size), jnp.float32,
                            -1.0 / math.sqrt(hidden_size), 1.0 / math.sqrt(hidden_size))

    params = prepare_params(w1, b1, w2, b2)     # one-time prep (pad + bf16)
    out = nn_classifier_forward(x, params)
    jax.block_until_ready(out)

    # Reference in plain JAX / f32 (same math as the PyTorch forward).
    ref = jax.nn.sigmoid(x @ w1 + b1) @ w2 + b2
    assert out.shape == (batch, output_size)
    # bf16 MXU operands (f32 accumulation) -> loosened tolerance vs f32 ref.
    assert jnp.allclose(out, ref, atol=3e-2, rtol=3e-2), \
        float(jnp.max(jnp.abs(out - ref)))

    print("KERNEL_OK")
</pallas_src>

<mosaic_0001>
module attributes {stable_mosaic.version = 11 : i64} {
  func.func @mlp_kernel(%arg0: i32, %arg1: i32, %arg2: memref<16x16xf32, #tpu.memory_space<vmem>>, %arg3: memref<16x128xbf16, #tpu.memory_space<vmem>>, %arg4: memref<1x128xf32, #tpu.memory_space<vmem>>, %arg5: memref<128x128xbf16, #tpu.memory_space<vmem>>, %arg6: memref<1x128xf32, #tpu.memory_space<vmem>>, %arg7: memref<16x8xf32, #tpu.memory_space<vmem>>) attributes {dimension_semantics = [#tpu.dimension_semantics<parallel>, #tpu.dimension_semantics<parallel>], iteration_bounds = array<i64: 2, 1>, scalar_prefetch = 0 : i64, scratch_operands = 0 : i64, tpu.core_type = #tpu.core_type<tc>, window_params = [{transform_indices = @transform_0, window_bounds = array<i64: 16, 16>}, {pipeline_mode = #tpu.pipeline_mode<synchronous>, transform_indices = @transform_1, window_bounds = array<i64: 16, 128>}, {pipeline_mode = #tpu.pipeline_mode<synchronous>, transform_indices = @transform_2, window_bounds = array<i64: 1, 128>}, {transform_indices = @transform_3, window_bounds = array<i64: 128, 128>}, {transform_indices = @transform_4, window_bounds = array<i64: 1, 128>}, {transform_indices = @transform_5, window_bounds = array<i64: 16, 8>}]} {
    %c0 = arith.constant 0 : index
    %c0_0 = arith.constant 0 : index
    %0 = vector.load %arg2[%c0, %c0_0] : memref<16x16xf32, #tpu.memory_space<vmem>>, vector<16x16xf32>
    %1 = arith.truncf %0 : vector<16x16xf32> to vector<16x16xbf16>
    %c0_1 = arith.constant 0 : index
    %c0_2 = arith.constant 0 : index
    %2 = vector.load %arg3[%c0_1, %c0_2] : memref<16x128xbf16, #tpu.memory_space<vmem>>, vector<16x128xbf16>
    %cst = arith.constant dense<0.000000e+00> : vector<16x128xf32>
    %3 = tpu.matmul %1, %2, %cst {dimension_numbers = #tpu.dot_dimension_numbers<[1], [0], [0], [1], [0, 0, 1, 1], [], []>} : vector<16x16xbf16>, vector<16x128xbf16>, vector<16x128xf32> -> vector<16x128xf32>
    %c0_3 = arith.constant 0 : index
    %c0_4 = arith.constant 0 : index
    %4 = vector.load %arg4[%c0_3, %c0_4] : memref<1x128xf32, #tpu.memory_space<vmem>>, vector<1x128xf32>
    %5 = vector.broadcast %4 : vector<1x128xf32> to vector<16x128xf32>
    %6 = arith.addf %3, %5 : vector<16x128xf32>
    %7 = arith.negf %6 : vector<16x128xf32>
    %8 = math.exp %7 : vector<16x128xf32>
    %cst_5 = arith.constant 1.000000e+00 : f32
    %9 = vector.broadcast %cst_5 : f32 to vector<16x128xf32>
    %10 = arith.addf %9, %8 : vector<16x128xf32>
    %11 = arith.divf %9, %10 : vector<16x128xf32>
    %12 = arith.truncf %11 : vector<16x128xf32> to vector<16x128xbf16>
    %c0_6 = arith.constant 0 : index
    %c0_7 = arith.constant 0 : index
    %13 = vector.load %arg5[%c0_6, %c0_7] : memref<128x128xbf16, #tpu.memory_space<vmem>>, vector<128x128xbf16>
    %cst_8 = arith.constant dense<0.000000e+00> : vector<16x128xf32>
    %14 = tpu.matmul %12, %13, %cst_8 {dimension_numbers = #tpu.dot_dimension_numbers<[1], [0], [0], [1], [0, 0, 1, 1], [], []>} : vector<16x128xbf16>, vector<128x128xbf16>, vector<16x128xf32> -> vector<16x128xf32>
    %c0_9 = arith.constant 0 : index
    %c0_10 = arith.constant 0 : index
    %15 = vector.load %arg6[%c0_9, %c0_10] : memref<1x128xf32, #tpu.memory_space<vmem>>, vector<1x128xf32>
    %16 = vector.broadcast %15 : vector<1x128xf32> to vector<16x128xf32>
    %17 = arith.addf %14, %16 : vector<16x128xf32>
    %18 = vector.extract_strided_slice %17 {offsets = [0, 0], sizes = [16, 8], strides = [1, 1]} : vector<16x128xf32> to vector<16x8xf32>
    %c0_11 = arith.constant 0 : index
    %c0_12 = arith.constant 0 : index
    %19 = vector.load %arg7[%c0_11, %c0_12] : memref<16x8xf32, #tpu.memory_space<vmem>>, vector<16x8xf32>
    tpu.vector_store %arg7[%c0_11, %c0_12], %18 {strides = array<i32>} : memref<16x8xf32, #tpu.memory_space<vmem>>, vector<16x8xf32>,
    return
  }
  func.func @transform_0(%arg0: i32, %arg1: i32) -> (i32, i32) {
    %c0_i32 = arith.constant 0 : i32
    %c0_i32_0 = arith.constant 0 : i32
    return %arg0, %c0_i32 : i32, i32
  }
  func.func @transform_1(%arg0: i32, %arg1: i32) -> (i32, i32) {
    %c0_i32 = arith.constant 0 : i32
    %c0_i32_0 = arith.constant 0 : i32
    %c0_i32_1 = arith.constant 0 : i32
    return %c0_i32, %c0_i32_0 : i32, i32
  }
  func.func @transform_2(%arg0: i32, %arg1: i32) -> (i32, i32) {
    %c0_i32 = arith.constant 0 : i32
    %c0_i32_0 = arith.constant 0 : i32
    %c0_i32_1 = arith.constant 0 : i32
    return %c0_i32, %c0_i32_0 : i32, i32
  }
  func.func @transform_3(%arg0: i32, %arg1: i32) -> (i32, i32) {
    %c0_i32 = arith.constant 0 : i32
    %c0_i32_0 = arith.constant 0 : i32
    return %c0_i32, %arg1 : i32, i32
  }
  func.func @transform_4(%arg0: i32, %arg1: i32) -> (i32, i32) {
    %c0_i32 = arith.constant 0 : i32
    %c0_i32_0 = arith.constant 0 : i32
    return %c0_i32, %arg1 : i32, i32
  }
  func.func @transform_5(%arg0: i32, %arg1: i32) -> (i32, i32) {
    %c0_i32 = arith.constant 0 : i32
    return %arg0, %arg1 : i32, i32
  }
}

</mosaic_0001>

<bundles_post_ra>
// kernel: tpu_custom_call.1
= control target key start
LH: loop header
LB: loop body
LE: loop exit
PB: predicated region body
PF: predicated region fallthrough
CT: control target
= control target key end

     0   :  { %10 = vsyncpa [#allocation3], 0  ;;  %s745_s18 = smov 0   ;;  %s747_s19 = smov 0   ;;  %s798_s0 = inlined_call_operand.vmem [shape: f32[32,16], index: 0, kind: input, shape index: {}]   ;;  %s799_s1 = inlined_call_operand.vmem [shape: bf16[16,128], index: 1, kind: input, shape index: {}]   ;;  %s800_s2 = inlined_call_operand.vmem [shape: f32[1,128], index: 2, kind: input, shape index: {}]   ;;  %s801_s3 = inlined_call_operand.hbm [shape: bf16[128,128], index: 3, kind: input, shape index: {}]   ;;  %s802_s4 = inlined_call_operand.vmem [shape: f32[1,128], index: 4, kind: input, shape index: {}]   ;;  %s803_s5 = inlined_call_operand.vmem [shape: f32[32,8], index: 5, kind: output, shape index: {}]  }
   0x1   :  { %s749_s20 = smov 0  }
   0x2 LB: > { %s545_s21 = sadd.s32 4294967295, %s710_s20   ;;  %s28_s22 = sadd.s32 1, %s706_s19  ;;  %s710_s20 = sphi %s749_s20, %s16_s20   ;;  %s706_s19 = sphi %s747_s19, %s805_s19   ;;  %s702_s18 = sphi %s745_s18, %s804_s18  }
   0x3   : > { %p30_p0 = scmp.ge.s32.totalorder %s28_s22, 2  ;;  %p547_p1 = scmp.ge.s32.totalorder %s710_s20, 1 }
   0x4   : > { %p181_p2 = scmp.lt.s32.totalorder %s710_s20, 3  ;;  %p615_p4 = scmp.eq.s32.totalorder %s545_s21, 0 }
   0x5   : > { %s807_s22 = smov (%p30_p0, %s28_s22), 0  ;;  %s200_s25 = sshll.u32 %s801_s3, 4  ;;  %s201_s25 = int_to_ptr.hbm [resolvable:$true] %s200_s25 }
   0x6   : > { %p182_p3 = pnand %p547_p1, %p181_p2  ;;  %s712_s26 = smov [#allocation2]  }
   0x7   : > { %s202_s27 = sshll.u32 %s712_s26, 4  ;;  %s713_s28 = smov 64   ;;  %s203_s27 = int_to_ptr.vmem [resolvable:$true] %s202_s27 }
   0x8   : > { %p611_p5 = pneg %p182_p3  ;;  %s714_s29 = smov 4  }
   0x9   : > { %233 = sbr.rel (%p182_p3) target bundleno = 327 (0x147), region = 40 }
   0xa   : > { %p612_p6 = pnand %p615_p4, %p611_p5 }
   0xc   : > { %614 = dma.hbm_to_vmem [thread:$0]  (!%p612_p6), %s201_s25, 1024, %s203_s27, [#allocation3], %s713_s28, %s713_s28, %s714_s29  }
   0xe   : > { %697 = dma.done.wait (%p615_p4), [#allocation3], 1024  }
   0xf   : > { %699 = vsyncadd (%p615_p4), [#allocation3], 4294966272  ;;  %s553_s30 = sshll.u32 %s702_s18, 1  ;;  %v598_v0 = vld [vmem:[%s799_s1] sm:$0xff]  ;;  %vm302_vm0 = vcmask 130048   ;;  %v606_v4 = vld [vmem:[#allocation2 + $0x38] sm:$0xff] }
  0x10   : > { %p269_p7 = scmp.lt.s32.totalorder %s553_s30, 3  ;;  %313 = vmatpush.bf16.msra.mxu0 %v598_v0  ;;  %427 = vmatpush.bf16.msra.mxu1 %v606_v4  ;;  %v605_v5 = vld [vmem:[#allocation2 + $0x30] sm:$0xff]  ;;  %v604_v6 = vld [vmem:[#allocation2 + $0x28] sm:$0xff]  ;;  %v603_v7 = vld [vmem:[#allocation2 + $0x20] sm:$0xff]  ;;  %vm441_vm9 = vcmask 64512  }
  0x11   : > { %v602_v8 = vld [vmem:[#allocation2 + $0x18] sm:$0xff]  ;;  %v601_v9 = vld [vmem:[#allocation2 + $0x10] sm:$0xff]  ;;  %v644_v10 = vld [vmem:[%s800_s2] ss:$0 sm:$0xff] }
  0x12   : > { %s809_s30 = smov (!%p269_p7, %s553_s30), 3  ;;  %v600_v11 = vld [vmem:[#allocation2 + $0x8] sm:$0xff]  ;;  %v599_v14 = vld [vmem:[#allocation2] sm:$0xff] }
  0x13   : > { %s554_s6 = sshll.u32 %s809_s30, 3  ;;  %v645_v44 = vld [vmem:[%s802_s4] ss:$0 sm:$0xff] }
  0x14   : > { %s272_s9 = scalar_lea.vmem %s798_s0, %s554_s6  ;;  %428 = vmatpush.bf16.msra.mxu1 %v605_v5  ;;  %s284_s18 = scalar_lea.vmem %s803_s5, %s554_s6 }
  0x15   : > { %v287_v1 = vld [vmem:[%s272_s9] sm:$0xff]  ;;  %v288_v2 = vld [vmem:[%s272_s9 + $0x8] sm:$0xff] }
  0x16   : > { %v289_v3 = vpack.c.bf16 %v288_v2, %v287_v1 }
  0x18   : > { %561 = vmatmul.msk.bf16.vlgmr.msra.gmra.mxu0 %vm302_vm0, %v289_v3  ;;  %429 = vmatpush.bf16.msra.mxu1 %v604_v6 }
  0x1c   : > { %430 = vmatpush.bf16.msra.mxu1 %v603_v7 }
  0x20   : > { %431 = vmatpush.bf16.msra.mxu1 %v602_v8 }
  0x24   : > { %432 = vmatpush.bf16.msra.mxu1 %v601_v9 }
  0x28   : > { %433 = vmatpush.bf16.msra.mxu1 %v600_v11 }
  0x2c   : > { %434 = vmatpush.bf16.msra.mxu1 %v599_v14 }
  0x95   : > { %v315_v12 = vpop.f32.mrf.mxu0 }
  0x96   : > { %v316_v13 = vadd.f32 %v644_v10, %v315_v12 }
  0x98   : > { %v562_v15 = vmul.f32 -1.442695, %v316_v13 }
  0x9a   : > { %646 = vpow2.f32 %v562_v15 }
  0x9d   : > { %v317_v16 = vpop.f32.mrf.mxu0 }
  0x9e   : > { %v318_v17 = vadd.f32 %v644_v10, %v317_v16 }
  0xa0   : > { %v647_v18 = vpop.eup %646  ;;  %v563_v19 = vmul.f32 -1.442695, %v318_v17 }
  0xa1   : > { %v326_v20 = vadd.f32 1.0, %v647_v18 }
  0xa2   : > { %648 = vpow2.f32 %v563_v19 }
  0xa3   : > { %650 = vrcp.f32 %v326_v20  ;;  %vm333_vm2 = vweird.f32 %v326_v20  ;;  %v339_v31 = vand.u32 2147483648, %v326_v20  ;;  %v337_v33 = vand.u32 2147483647, %v326_v20 }
  0xa5   : > { %v340_v38 = vor.u32 1.1754944e-38, %v339_v31  ;;  %vm338_vm7 = vcmp.eq.f32.partialorder %v337_v33, 8.507059e+37 }
  0xa8   : > { %v649_v21 = vpop.eup %648 }
  0xa9   : > { %v651_v22 = vpop.eup %650  ;;  %v327_v23 = vadd.f32 1.0, %v649_v21 }
  0xaa   : > { %v329_v24 = vmul.f32 %v651_v22, %v326_v20  ;;  %vm334_vm1 = vweird.f32 %v651_v22 }
  0xab   : > { %652 = vrcp.f32 %v327_v23  ;;  %v354_v32 = vand.u32 2147483648, %v327_v23  ;;  %v352_v35 = vand.u32 2147483647, %v327_v23  ;;  %vm335_vm4 = vmor %vm333_vm2, %vm334_vm1  ;;  %vm348_vm5 = vweird.f32 %v327_v23 }
  0xac   : > { %v330_v25 = vsub.f32 1.0, %v329_v24 }
  0xad   : > { %v355_v39 = vor.u32 1.1754944e-38, %v354_v32  ;;  %vm353_vm8 = vcmp.eq.f32.partialorder %v352_v35, 8.507059e+37 }
  0xae   : > { %v331_v26 = vmul.f32 %v651_v22, %v330_v25 }
  0xb0   : > { %v332_v29 = vadd.f32 %v651_v22, %v331_v26 }
  0xb1   : > { %v653_v27 = vpop.eup %652 }
  0xb2   : > { %v344_v28 = vmul.f32 %v653_v27, %v327_v23  ;;  %vm349_vm3 = vweird.f32 %v653_v27  ;;  %v336_v36 = vsel %vm335_vm4, %v651_v22, %v332_v29 }
  0xb3   : > { %vm350_vm6 = vmor %vm348_vm5, %vm349_vm3  ;;  %v341_v41 = vsel %vm338_vm7, %v340_v38, %v336_v36 }
  0xb4   : > { %v345_v30 = vsub.f32 1.0, %v344_v28 }
  0xb6   : > { %v346_v34 = vmul.f32 %v653_v27, %v345_v30 }
  0xb8   : > { %v347_v37 = vadd.f32 %v653_v27, %v346_v34 }
  0xba   : > { %v351_v40 = vsel %vm350_vm6, %v653_v27, %v347_v37 }
  0xbb   : > { %v356_v42 = vsel %vm353_vm8, %v355_v39, %v351_v40 }
  0xbc   : > { %v358_v43 = vpack.c.bf16 %v356_v42, %v341_v41 }
  0xbe   : > { %435 = vmatmul.bf16.vlgmr.msra.gmra.mxu1 %v358_v43 }
 0x13b   : > { %v436_v45 = vpop.f32.mrf.mxu1 }
 0x13c   : > { %v437_v46 = vadd.f32 %v645_v44, %v436_v45 }
 0x13e   : > { %442 = vst.msk [vmem:[%s284_s18] sm:$0xff] %vm441_vm9, %v437_v46 }
 0x143   : > { %v438_v47 = vpop.f32.mrf.mxu1 }
 0x144   : > { %v439_v48 = vadd.f32 %v645_v44, %v438_v47 }
 0x146   : > { %443 = vst.msk [vmem:[%s284_s18 + $0x8] sm:$0xff] %vm441_vm9, %v439_v48 }
 0x147 PF: > { %s16_s20 = sadd.s32 1, %s710_s20   ;;  %s804_s18 = smov %s706_s19 }
 0x148   : > { %p13_p8 = scmp.ge.s32.totalorder %s16_s20, 4   ;;  %s805_s19 = smov %s807_s22 }
 0x14a   :  { %15 = sbr.rel (!%p13_p8) target bundleno = 2 (0x2), region = 79 }
 0x14f   :  { %472 = vsyncpa [#allocation3], 1 }
 0x150   :  { %474 = vsyncpa [#allocation3 + $0x1], 1 }

</bundles_post_ra>
